<compile_context>
chip_gen: v6e
topology: v6e:2x2x1
jax: 0.10.0
libtpu: 0.0.40
codegen_flags: <defaults>
</compile_context>

<pallas_src>
import math
import functools

import jax
import jax.numpy as jnp
from jax import lax
from jax.experimental import pallas as pl
from jax.experimental.pallas import tpu as pltpu


_NEG_INF = -1e30        # large finite negative: exp underflows to exactly 0.0
_MAX_KV_CHUNKS = 16     # static-unroll cap for the causal KV-skip loop


# --------------------------------------------------------------------------
# Kernels
# --------------------------------------------------------------------------
def _sdpa_kernel_simple(q_ref, k_ref, v_ref, o_ref, w_ref, *,
                        tq: int, auto_regressive_mask: bool):
    """Monolithic body: one (b, h, q-tile) step over the full key axis.

    Block shapes (leading batch/head dims squeezed away by the BlockSpec):
      q_ref: (tq, D)   k_ref / v_ref: (S, D)   o_ref: (tq, D)   w_ref: (tq, S)
    """
    q = q_ref[...]
    k = k_ref[...]
    v = v_ref[...]
    d_k = q.shape[-1]

    # Fold 1/sqrt(d_k) into Q: tq*D multiplies instead of tq*S.
    q = q * jnp.asarray(1.0 / math.sqrt(d_k), dtype=q.dtype)

    # Q . K^T without materializing K^T (contract dim 1 vs dim 1).
    s = lax.dot_general(q, k, (((1,), (1,)), ((), ())),
                        preferred_element_type=jnp.float32)        # (tq, S) f32

    if auto_regressive_mask:
        q_start = pl.program_id(2) * tq
        rows = q_start + lax.broadcasted_iota(jnp.int32, (tq, 1), 0)
        cols = lax.broadcasted_iota(jnp.int32, (1, s.shape[-1]), 1)
        s = jnp.where(rows >= cols, s, _NEG_INF)                   # skinny iotas

    # Numerically stable softmax in f32; exact normalization of the (tq,1)
    # denominator (cheap) so stored weights match torch.softmax.
    m = jnp.max(s, axis=-1, keepdims=True)
    e = jnp.exp(s - m)
    inv = 1.0 / jnp.sum(e, axis=-1, keepdims=True)

    # Single cast, reused for both the PV matmul and the weights store.
    pw = (e * inv).astype(w_ref.dtype)
    o_ref[...] = jnp.dot(pw, v, preferred_element_type=jnp.float32
                         ).astype(o_ref.dtype)
    w_ref[...] = pw


def _sdpa_kernel_causal_chunked(q_ref, k_ref, v_ref, o_ref, w_ref,
                                s_scr, m_scr, d_scr, acc_scr, *,
                                tq: int, tkv: int, n_kv: int):
    """Causal body with KV chunking: fully masked chunks are skipped (pl.when)
    and their weights columns zero-filled.

      q_ref: (tq, D)   k_ref / v_ref: (S, D)   o_ref: (tq, D)   w_ref: (tq, S)
      s_scr: (tq, S) f32   m_scr/d_scr: (tq, 1) f32   acc_scr: (tq, D) f32
    """
    qi = pl.program_id(2)
    q_start = qi * tq

    q = q_ref[...]
    d_k = q.shape[-1]
    q = q * jnp.asarray(1.0 / math.sqrt(d_k), dtype=q.dtype)
    rows = q_start + lax.broadcasted_iota(jnp.int32, (tq, 1), 0)   # (tq, 1)

    m_scr[...] = jnp.full(m_scr.shape, _NEG_INF, jnp.float32)
    d_scr[...] = jnp.zeros(d_scr.shape, jnp.float32)
    acc_scr[...] = jnp.zeros(acc_scr.shape, jnp.float32)

    # ---- Pass 1: masked scores for live chunks -> scratch; running row max.
    for c in range(n_kv):
        lo = c * tkv
        live = lo < q_start + tq           # chunk has at least one live column

        @pl.when(live)
        def _(lo=lo):
            kc = k_ref[lo:lo + tkv, :]                                 # (tkv, D)
            s = lax.dot_general(q, kc, (((1,), (1,)), ((), ())),
                                preferred_element_type=jnp.float32)    # (tq, tkv)
            cols = lo + lax.broadcasted_iota(jnp.int32, (1, tkv), 1)
            s = jnp.where(rows >= cols, s, _NEG_INF)
            s_scr[:, lo:lo + tkv] = s
            m_scr[...] = jnp.maximum(m_scr[...],
                                     jnp.max(s, axis=-1, keepdims=True))

    m = m_scr[...]

    # ---- Pass 2: exp + denominator; overwrite scratch with e.
    for c in range(n_kv):
        lo = c * tkv
        live = lo < q_start + tq

        @pl.when(live)
        def _(lo=lo):
            e = jnp.exp(s_scr[:, lo:lo + tkv] - m)
            s_scr[:, lo:lo + tkv] = e
            d_scr[...] += jnp.sum(e, axis=-1, keepdims=True)

    inv = 1.0 / d_scr[...]                                             # exact

    # ---- Pass 3: normalize + store weights + PV accumulate; zero dead chunks.
    zeros_chunk = jnp.zeros((tq, tkv), w_ref.dtype)
    for c in range(n_kv):
        lo = c * tkv
        live = lo < q_start + tq

        @pl.when(live)
        def _(lo=lo):
            pw = (s_scr[:, lo:lo + tkv] * inv).astype(w_ref.dtype)
            w_ref[:, lo:lo + tkv] = pw
            acc_scr[...] += jnp.dot(pw, v_ref[lo:lo + tkv, :],
                                    preferred_element_type=jnp.float32)

        @pl.when(jnp.logical_not(live))
        def _(lo=lo):
            w_ref[:, lo:lo + tkv] = zeros_chunk

    o_ref[...] = acc_scr[...].astype(o_ref.dtype)


# --------------------------------------------------------------------------
# Tiling / VMEM sizing
# --------------------------------------------------------------------------
def _pick_tiling(S: int, D: int, itemsize: int):
    """Pick the q-tile and a vmem_limit_bytes sized for this chip generation."""
    phys = 64 * 1024 * 1024                      # conservative default (v7x)
    try:
        info = pltpu.get_tpu_info()
        cap = getattr(info, "vmem_capacity_bytes", None)
        if cap:
            phys = int(cap)
    except Exception:
        pass
    budget = int(phys * 0.75)                    # ~96 MiB v5e/v6e, ~48 MiB v7x

    def working_set(t):
        pipelined = 2 * (2 * t * D * itemsize    # Q + O blocks (double-buffered)
                         + t * S * itemsize      # weights block
                         + 2 * S * D * itemsize)  # resident K + V blocks
        f32_live = 4 * t * S * 4 + 4 * t * D * 4  # scores/exp/f32-weights + acc
        return pipelined + f32_live

    tq = None
    for t in (1024, 512, 256, 128):
        if S % t == 0 and working_set(t) <= budget:
            tq = t
            break
    if tq is None:
        # Small / irregular S, or huge S where even 128 overshoots the budget.
        tq = 128 if (S % 128 == 0) else S

    vmem_limit = min(int(phys * 0.95),
                     max(budget, working_set(tq) + (8 << 20)))
    return tq, vmem_limit


# --------------------------------------------------------------------------
# Wrapper
# --------------------------------------------------------------------------
def scaled_dot_product_attention(Q, K, V, auto_regressive_mask: bool = True):
    """Pallas equivalent of ScaledDotProductAttention.forward.

    Returns (weights @ V, weights), matching the PyTorch module.
    """
    B, H, S, D = Q.shape
    assert K.shape == (B, H, S, D) and V.shape == (B, H, S, D)

    itemsize = jnp.dtype(Q.dtype).itemsize
    tq, vmem_limit = _pick_tiling(S, D, itemsize)
    n_q = S // tq
    assert n_q * tq == S

    # Causal KV-chunking: chunk size is a multiple of tq so the live/dead
    # boundary is chunk aligned; unroll count capped at _MAX_KV_CHUNKS.
    use_chunked = bool(auto_regressive_mask) and n_q >= 2
    tkv, n_kv = S, 1
    if use_chunked:
        mult = next((mm for mm in range(1, n_q + 1)
                     if n_q % mm == 0 and n_q // mm <= _MAX_KV_CHUNKS), n_q)
        tkv = mult * tq
        n_kv = n_q // mult
        use_chunked = n_kv >= 2

    if use_chunked:
        kernel = functools.partial(_sdpa_kernel_causal_chunked,
                                   tq=tq, tkv=tkv, n_kv=n_kv)
        scratch_shapes = (
            pltpu.VMEM((tq, S), jnp.float32),   # scores / exp strip
            pltpu.VMEM((tq, 1), jnp.float32),   # running row max
            pltpu.VMEM((tq, 1), jnp.float32),   # softmax denominator
            pltpu.VMEM((tq, D), jnp.float32),   # PV accumulator
        )
    else:
        kernel = functools.partial(_sdpa_kernel_simple, tq=tq,
                                   auto_regressive_mask=bool(auto_regressive_mask))
        scratch_shapes = ()

    q_spec = pl.BlockSpec((None, None, tq, D), lambda b, h, qi: (b, h, qi, 0))
    kv_spec = pl.BlockSpec((None, None, S, D), lambda b, h, qi: (b, h, 0, 0))
    o_spec = pl.BlockSpec((None, None, tq, D), lambda b, h, qi: (b, h, qi, 0))
    w_spec = pl.BlockSpec((None, None, tq, S), lambda b, h, qi: (b, h, qi, 0))

    # Advisory cost estimate (halved for the causal skip).
    flops = 4 * B * H * S * S * D
    transcendentals = B * H * S * S
    if auto_regressive_mask:
        flops //= 2
        transcendentals //= 2
    bytes_accessed = (4 * B * H * S * D * itemsize      # Q, K, V, O
                      + B * H * S * S * itemsize)       # weights write
    cost = pl.CostEstimate(flops=flops, transcendentals=transcendentals,
                           bytes_accessed=bytes_accessed)

    out, weights = pl.pallas_call(
        kernel,
        out_shape=(
            jax.ShapeDtypeStruct((B, H, S, D), Q.dtype),
            # Weights in the input dtype (matches torch softmax dtype; halves
            # the dominant S^2 HBM write for bf16 inputs).
            jax.ShapeDtypeStruct((B, H, S, S), Q.dtype),
        ),
        grid_spec=pltpu.PrefetchScalarGridSpec(
            num_scalar_prefetch=0,
            grid=(B, H, n_q),
            in_specs=[q_spec, kv_spec, kv_spec],
            out_specs=(o_spec, w_spec),
            scratch_shapes=scratch_shapes),
        compiler_params=pltpu.CompilerParams(
            # q-tile axis is "arbitrary" so a megacore split lands on B/H and
            # the two v7x cores never both stream the same full-S K/V block.
            dimension_semantics=("parallel", "parallel", "arbitrary"),
            vmem_limit_bytes=int(vmem_limit)),
        cost_estimate=cost,
    )(Q, K, V)
    return out, weights


# --------------------------------------------------------------------------
# Reference + tests
# --------------------------------------------------------------------------
def _reference(Q, K, V, auto_regressive_mask: bool):
    B, H, S, D = Q.shape
    q = Q.astype(jnp.float32)
    k = K.astype(jnp.float32)
    v = V.astype(jnp.float32)
    scores = jnp.einsum("bhqd,bhkd->bhqk", q, k) / math.sqrt(D)
    if auto_regressive_mask:
        mask = jnp.tril(jnp.ones((S, S), dtype=jnp.float32))
        scores = jnp.where(mask == 0, -jnp.inf, scores)
    w = jax.nn.softmax(scores, axis=-1)
    return jnp.einsum("bhqk,bhkd->bhqd", w, v), w


def _bf16_representable_normal(key, shape, dtype):
    # bf16-representable values: the MXU's default-precision bf16 operand pass
    # is then lossless on the QK^T matmul, so f32 checks can stay tight.
    x = jax.random.normal(key, shape, dtype=jnp.float32)
    return x.astype(jnp.bfloat16).astype(dtype)


if __name__ == "__main__":
    k1, k2, k3, k4, k5, k6 = jax.random.split(jax.random.PRNGKey(0), 6)

    # --- Case 1: f32, single q-tile (simple path), causal mask. ---
    B, H, S, D = 2, 4, 16, 64        # d_k=64 -> 1/sqrt(d_k)=0.125 exact in bf16
    Q = _bf16_representable_normal(k1, (B, H, S, D), jnp.float32)
    K = _bf16_representable_normal(k2, (B, H, S, D), jnp.float32)
    V = _bf16_representable_normal(k3, (B, H, S, D), jnp.float32)

    out, w = scaled_dot_product_attention(Q, K, V, auto_regressive_mask=True)
    out, w = jax.block_until_ready((out, w))
    ref_out, ref_w = _reference(Q, K, V, True)
    assert not bool(jnp.any(jnp.isnan(out))), "case1: NaN in output"
    assert jnp.allclose(out, ref_out, atol=2e-2, rtol=2e-2), "case1: output mismatch"
    assert jnp.allclose(w, ref_w, atol=5e-3, rtol=5e-3), "case1: weights mismatch"
    assert jnp.allclose(jnp.sum(w, axis=-1), 1.0, atol=5e-3), "case1: row sums != 1"
    upper = jnp.triu(jnp.ones((S, S), dtype=jnp.float32), k=1)
    assert float(jnp.max(jnp.abs(w * upper))) < 1e-6, "case1: masked weights not 0"

    # --- Case 1b: same inputs, no causal mask (simple path). ---
    out_nm, w_nm = scaled_dot_product_attention(Q, K, V, auto_regressive_mask=False)
    out_nm, w_nm = jax.block_until_ready((out_nm, w_nm))
    ref_out_nm, ref_w_nm = _reference(Q, K, V, False)
    assert jnp.allclose(out_nm, ref_out_nm, atol=2e-2, rtol=2e-2), "case1b: output mismatch"
    assert jnp.allclose(w_nm, ref_w_nm, atol=5e-3, rtol=5e-3), "case1b: weights mismatch"

    # --- Case 2: bf16, GPT-2 head dim, 3 q-tiles -> causal KV-skip path. ---
    B2, H2, S2, D2 = 2, 2, 384, 64
    Q2 = _bf16_representable_normal(k4, (B2, H2, S2, D2), jnp.bfloat16)
    K2 = _bf16_representable_normal(k5, (B2, H2, S2, D2), jnp.bfloat16)
    V2 = _bf16_representable_normal(k6, (B2, H2, S2, D2), jnp.bfloat16)

    out2, w2 = scaled_dot_product_attention(Q2, K2, V2, auto_regressive_mask=True)
    out2, w2 = jax.block_until_ready((out2, w2))
    ref_out2, ref_w2 = _reference(Q2, K2, V2, True)
    out2f = out2.astype(jnp.float32)
    w2f = w2.astype(jnp.float32)
    assert not bool(jnp.any(jnp.isnan(out2f))), "case2: NaN in output"
    assert jnp.allclose(out2f, ref_out2, atol=5e-2, rtol=5e-2), "case2: output mismatch"
    assert jnp.allclose(w2f, ref_w2, atol=2e-2, rtol=2e-2), "case2: weights mismatch"
    assert jnp.allclose(jnp.sum(w2f, axis=-1), 1.0, atol=2e-2), "case2: row sums != 1"
    upper2 = jnp.triu(jnp.ones((S2, S2), dtype=jnp.float32), k=1)
    assert float(jnp.max(jnp.abs(w2f * upper2))) < 1e-6, "case2: masked weights not 0"

    print("KERNEL_OK")
</pallas_src>

<mosaic_0001>
module attributes {stable_mosaic.version = 11 : i64} {
  func.func @_sdpa_kernel_simple(%arg0: i32, %arg1: i32, %arg2: i32, %arg3: memref<1x1x16x64xf32, #tpu.memory_space<vmem>>, %arg4: memref<1x1x16x64xf32, #tpu.memory_space<vmem>>, %arg5: memref<1x1x16x64xf32, #tpu.memory_space<vmem>>, %arg6: memref<1x1x16x64xf32, #tpu.memory_space<vmem>>, %arg7: memref<1x1x16x16xf32, #tpu.memory_space<vmem>>) attributes {dimension_semantics = [#tpu.dimension_semantics<parallel>, #tpu.dimension_semantics<parallel>, #tpu.dimension_semantics<arbitrary>], iteration_bounds = array<i64: 2, 4, 1>, scalar_prefetch = 0 : i64, scratch_operands = 0 : i64, tpu.core_type = #tpu.core_type<tc>, window_params = [{transform_indices = @transform_0, window_bounds = array<i64: 1, 1, 16, 64>}, {transform_indices = @transform_1, window_bounds = array<i64: 1, 1, 16, 64>}, {transform_indices = @transform_2, window_bounds = array<i64: 1, 1, 16, 64>}, {transform_indices = @transform_3, window_bounds = array<i64: 1, 1, 16, 64>}, {transform_indices = @transform_4, window_bounds = array<i64: 1, 1, 16, 16>}]} {
    %c0 = arith.constant 0 : index
    %c0_0 = arith.constant 0 : index
    %c0_1 = arith.constant 0 : index
    %c0_2 = arith.constant 0 : index
    %0 = vector.load %arg3[%c0, %c0_0, %c0_1, %c0_2] : memref<1x1x16x64xf32, #tpu.memory_space<vmem>>, vector<1x1x16x64xf32>
    %1 = vector.shape_cast %0 : vector<1x1x16x64xf32> to vector<16x64xf32>
    %c0_3 = arith.constant 0 : index
    %c0_4 = arith.constant 0 : index
    %c0_5 = arith.constant 0 : index
    %c0_6 = arith.constant 0 : index
    %2 = vector.load %arg4[%c0_3, %c0_4, %c0_5, %c0_6] : memref<1x1x16x64xf32, #tpu.memory_space<vmem>>, vector<1x1x16x64xf32>
    %3 = vector.shape_cast %2 : vector<1x1x16x64xf32> to vector<16x64xf32>
    %c0_7 = arith.constant 0 : index
    %c0_8 = arith.constant 0 : index
    %c0_9 = arith.constant 0 : index
    %c0_10 = arith.constant 0 : index
    %4 = vector.load %arg5[%c0_7, %c0_8, %c0_9, %c0_10] : memref<1x1x16x64xf32, #tpu.memory_space<vmem>>, vector<1x1x16x64xf32>
    %5 = vector.shape_cast %4 : vector<1x1x16x64xf32> to vector<16x64xf32>
    %cst = arith.constant 1.250000e-01 : f32
    %6 = vector.broadcast %cst : f32 to vector<16x64xf32>
    %7 = arith.mulf %1, %6 : vector<16x64xf32>
    %cst_11 = arith.constant dense<0.000000e+00> : vector<16x16xf32>
    %8 = tpu.matmul %7, %3, %cst_11 {dimension_numbers = #tpu.dot_dimension_numbers<[1], [1], [0], [0], [0, 0, 1, 0], [], []>} : vector<16x64xf32>, vector<16x64xf32>, vector<16x16xf32> -> vector<16x16xf32>
    %c16_i32 = arith.constant 16 : i32
    %9 = arith.muli %arg2, %c16_i32 : i32
    %10 = tpu.iota {dimensions = array<i32: 0>} : vector<16x1xi32>
    %11 = vector.broadcast %9 : i32 to vector<16x1xi32>
    %12 = arith.addi %11, %10 : vector<16x1xi32>
    %13 = tpu.iota {dimensions = array<i32: 1>} : vector<1x16xi32>
    %14 = vector.broadcast %12 : vector<16x1xi32> to vector<16x16xi32>
    %15 = vector.broadcast %13 : vector<1x16xi32> to vector<16x16xi32>
    %16 = arith.cmpi sge, %14, %15 : vector<16x16xi32>
    %cst_12 = arith.constant -1.000000e+30 : f32
    %17 = vector.broadcast %cst_12 : f32 to vector<16x16xf32>
    %18 = arith.select %16, %8, %17 : vector<16x16xi1>, vector<16x16xf32>
    %cst_13 = arith.constant dense<0xFF800000> : vector<16xf32>
    %19 = vector.multi_reduction <maximumf>, %18, %cst_13 [1] : vector<16x16xf32> to vector<16xf32>
    %20 = vector.shape_cast %19 : vector<16xf32> to vector<16x1xf32>
    %21 = vector.broadcast %20 : vector<16x1xf32> to vector<16x16xf32>
    %22 = arith.subf %18, %21 : vector<16x16xf32>
    %23 = math.exp %22 : vector<16x16xf32>
    %cst_14 = arith.constant dense<0.000000e+00> : vector<16xf32>
    %24 = vector.multi_reduction <add>, %23, %cst_14 [1] : vector<16x16xf32> to vector<16xf32>
    %25 = vector.shape_cast %24 : vector<16xf32> to vector<16x1xf32>
    %cst_15 = arith.constant 1.000000e+00 : f32
    %26 = vector.broadcast %cst_15 : f32 to vector<16x1xf32>
    %27 = arith.divf %26, %25 : vector<16x1xf32>
    %28 = vector.broadcast %27 : vector<16x1xf32> to vector<16x16xf32>
    %29 = arith.mulf %23, %28 : vector<16x16xf32>
    %cst_16 = arith.constant dense<0.000000e+00> : vector<16x64xf32>
    %30 = tpu.matmul %29, %5, %cst_16 {dimension_numbers = #tpu.dot_dimension_numbers<[1], [0], [0], [1], [0, 0, 1, 1], [], []>} : vector<16x16xf32>, vector<16x64xf32>, vector<16x64xf32> -> vector<16x64xf32>
    %c0_17 = arith.constant 0 : index
    %c0_18 = arith.constant 0 : index
    %c0_19 = arith.constant 0 : index
    %c0_20 = arith.constant 0 : index
    %31 = vector.load %arg6[%c0_17, %c0_18, %c0_19, %c0_20] : memref<1x1x16x64xf32, #tpu.memory_space<vmem>>, vector<1x1x16x64xf32>
    %32 = vector.shape_cast %31 : vector<1x1x16x64xf32> to vector<16x64xf32>
    %33 = vector.shape_cast %30 : vector<16x64xf32> to vector<1x1x16x64xf32>
    tpu.vector_store %arg6[%c0_17, %c0_18, %c0_19, %c0_20], %33 {strides = array<i32>} : memref<1x1x16x64xf32, #tpu.memory_space<vmem>>, vector<1x1x16x64xf32>,
    %c0_21 = arith.constant 0 : index
    %c0_22 = arith.constant 0 : index
    %c0_23 = arith.constant 0 : index
    %c0_24 = arith.constant 0 : index
    %34 = vector.load %arg7[%c0_21, %c0_22, %c0_23, %c0_24] : memref<1x1x16x16xf32, #tpu.memory_space<vmem>>, vector<1x1x16x16xf32>
    %35 = vector.shape_cast %34 : vector<1x1x16x16xf32> to vector<16x16xf32>
    %36 = vector.shape_cast %29 : vector<16x16xf32> to vector<1x1x16x16xf32>
    tpu.vector_store %arg7[%c0_21, %c0_22, %c0_23, %c0_24], %36 {strides = array<i32>} : memref<1x1x16x16xf32, #tpu.memory_space<vmem>>, vector<1x1x16x16xf32>,
    return
  }
  func.func @transform_0(%arg0: i32, %arg1: i32, %arg2: i32) -> (i32, i32, i32, i32) {
    %c0_i32 = arith.constant 0 : i32
    %c0_i32_0 = arith.constant 0 : i32
    return %arg0, %arg1, %arg2, %c0_i32 : i32, i32, i32, i32
  }
  func.func @transform_1(%arg0: i32, %arg1: i32, %arg2: i32) -> (i32, i32, i32, i32) {
    %c0_i32 = arith.constant 0 : i32
    %c0_i32_0 = arith.constant 0 : i32
    %c0_i32_1 = arith.constant 0 : i32
    return %arg0, %arg1, %c0_i32, %c0_i32_0 : i32, i32, i32, i32
  }
  func.func @transform_2(%arg0: i32, %arg1: i32, %arg2: i32) -> (i32, i32, i32, i32) {
    %c0_i32 = arith.constant 0 : i32
    %c0_i32_0 = arith.constant 0 : i32
    %c0_i32_1 = arith.constant 0 : i32
    return %arg0, %arg1, %c0_i32, %c0_i32_0 : i32, i32, i32, i32
  }
  func.func @transform_3(%arg0: i32, %arg1: i32, %arg2: i32) -> (i32, i32, i32, i32) {
    %c0_i32 = arith.constant 0 : i32
    %c0_i32_0 = arith.constant 0 : i32
    return %arg0, %arg1, %arg2, %c0_i32 : i32, i32, i32, i32
  }
  func.func @transform_4(%arg0: i32, %arg1: i32, %arg2: i32) -> (i32, i32, i32, i32) {
    %c0_i32 = arith.constant 0 : i32
    %c0_i32_0 = arith.constant 0 : i32
    return %arg0, %arg1, %arg2, %c0_i32 : i32, i32, i32, i32
  }
}

</mosaic_0001>

<bundles_post_ra>
// kernel: tpu_custom_call.1
= control target key start
LH: loop header
LB: loop body
LE: loop exit
PB: predicated region body
PF: predicated region fallthrough
CT: control target
= control target key end

     0   :  { %s1504_s0 = inlined_call_operand.hbm [shape: f32[2,4,16,64], index: 0, kind: input, shape index: {}]   ;;  %s1505_s1 = inlined_call_operand.hbm [shape: f32[2,4,16,64], index: 1, kind: input, shape index: {}]   ;;  %s1506_s2 = inlined_call_operand.hbm [shape: f32[2,4,16,64], index: 2, kind: input, shape index: {}]   ;;  %s1507_s3 = inlined_call_operand.hbm [shape: f32[2,4,16,64], index: 3, kind: output, shape index: {0}]   ;;  %s1508_s4 = inlined_call_operand.hbm [shape: f32[2,4,16,16], index: 4, kind: output, shape index: {1}]  }
   0x1   :  { %1517 = sst [smem:[#allocation21_spill]] %s1504_s0 }
   0x2   :  { %1518 = sst [smem:[#allocation22_spill]] %s1505_s1 }
   0x3   :  { %10 = vsyncpa [#allocation3], 0 }
   0x4   :  { %12 = vsyncpa [#allocation3 + $0x1], 0 }
   0x5   :  { %13 = vsyncpa [#allocation6], 0 }
   0x6   :  { %15 = vsyncpa [#allocation6 + $0x1], 0 }
   0x7   :  { %16 = vsyncpa [#allocation4], 0 }
   0x8   :  { %18 = vsyncpa [#allocation4 + $0x1], 0 }
   0x9   :  { %19 = vsyncpa [#allocation10], 0 }
   0xa   :  { %21 = vsyncpa [#allocation10 + $0x1], 0  ;;  %s1210_s15 = smov 0   ;;  %s1212_s16 = smov 0  }
   0xb   :  { %s1214_s17 = smov 0   ;;  %s1216_s18 = smov 0  }
   0xc   :  { %s1218_s19 = smov 0   ;;  %s1220_s20 = smov 0  }
   0xd   :  { %s1222_s21 = smov 0   ;;  %s1224_s22 = smov 0  }
   0xe LB: > { %1519 = sst [smem:[#allocation15_spill]] %s1154_s17  ;;  %s1251_s23 = sadd.s32 4294967295, %s1174_s22   ;;  %s1174_s22 = sphi %s1224_s22, %s27_s22   ;;  %s1170_s21 = sphi %s1222_s21, %s1540_s21   ;;  %s1166_s20 = sphi %s1220_s20, %s1539_s20   ;;  %s1162_s19 = sphi %s1218_s19, %s1538_s19   ;;  %s1158_s18 = sphi %s1216_s18, %s1537_s18   ;;  %s1154_s17 = sphi %s1214_s17, %s1536_s17   ;;  %s1150_s16 = sphi %s1212_s16, %s1542_s16   ;;  %s1146_s15 = sphi %s1210_s15, %s1541_s15  }
   0xf   : > { %1520 = sst [smem:[#allocation16_spill]] %s1166_s20  ;;  %s796_s24 = sadd.s32 4294967294, %s1174_s22  }
  0x10   : > { %1521 = sst [smem:[#allocation17_spill]] %s1170_s21  ;;  %s42_s25 = sadd.s32 1, %s1166_s20 }
  0x11   : > { %s46_s26 = sadd.s32 1, %s1170_s21  ;;  %p44_p0 = scmp.ge.s32.totalorder %s42_s25, 4 }
  0x12   : > { %s57_s27 = sadd.s32 1, %s1154_s17  ;;  %p64_p1 = scmp.ne.s32.totalorder %s1154_s17, %s1150_s16 }
  0x13   : > { %p65_p2 = scmp.eq.s32.totalorder %s1174_s22, 0  ;;  %s1544_s25 = smov (%p44_p0, %s42_s25), 0 }
  0x14   : > { %1522 = sst [smem:[#allocation18_spill]] %s1544_s25  ;;  %s1546_s26 = smov (!%p44_p0, %s46_s26), %s1170_s21 }
  0x15   : > { %s51_s28 = ssub.s32 %s1166_s20, %s1544_s25  ;;  %p1265_p3 = por %p65_p2, %p64_p1 }
  0x16   : > { %p48_p4 = scmp.ge.s32.totalorder %s1546_s26, 2  ;;  %p70_p5 = scmp.ne.s32.totalorder %s1150_s16, %s1146_s15 }
  0x17   : > { %p71_p6 = scmp.eq.s32.totalorder %s1251_s23, 0  ;;  %p154_p7 = scmp.eq.s32.totalorder %s1251_s23, 7 }
  0x18   : > { %s1548_s26 = smov (%p48_p4, %s1546_s26), 0  ;;  %p160_p10 = scmp.eq.s32.totalorder %s796_s24, 7 }
  0x19   : > { %1524 = sst [smem:[#allocation19_spill]] %s1548_s26  ;;  %p1275_p8 = por %p71_p6, %p70_p5 }
  0x1a   : > { %p1279_p9 = por %p154_p7, %p64_p1  ;;  %s50_s6 = ssub.s32 %s1170_s21, %s1548_s26 }
  0x1b   : > { %s52_s7 = sor.u32 %s51_s28, %s50_s6  ;;  %p1285_p12 = por %p160_p10, %p70_p5 }
  0x1c   : > { %p55_p11 = scmp.eq.s32.totalorder %s52_s7, 0  ;;  %p882_p13 = scmp.lt.s32.totalorder %s1174_s22, 8 }
  0x1d   : > { %s1509_s9 = sand.u32 1, %s1154_s17   ;;  %s800_s12 = sshll.u32 %s1166_s20, 1 }
  0x1e   : > { %s1292_s10 = scalar_select %p55_p11, %s1154_s17, %s57_s27  }
  0x1f   : > { %s1296_s11 = sshll.u32 %s1509_s9, 4  ;;  %s801_s13 = sshll.u32 %s1170_s21, 3 }
  0x20   : > { %1528 = sst [smem:[#allocation20_spill]] %s1292_s10  ;;  %p1302_p0 = pnand %p882_p13, %p1265_p3 }
  0x21   : > { %s222_s24 = sadd.s32 %s801_s13, %s800_s12  ;;  %s235_s6 = sand.u32 1, %s1174_s22  }
  0x22   : > { %s1306_s28 = sshll.u32 %s222_s24, 7  ;;  %s1530_s1 = sld [smem:[#allocation22_spill]] }
  0x23   : > { %s239_s26 = scalar_lea.vmem [#allocation5], %s1296_s11  ;;  %p811_p1 = scmp.ge.s32.totalorder %s1174_s22, 1 }
  0x24   : > { %s248_s25 = sshll.u32 %s239_s26, 4  ;;  %s1315_s29 = scalar_lea.sflag [#allocation6], %s235_s6  ;;  %s249_s25 = int_to_ptr.vmem [resolvable:$true] %s248_s25 }
  0x25   : > { %p962_p2 = pneg %p1302_p0  ;;  %s973_s21 = scalar_lea.vmem %s249_s25, 256 }
  0x26   : > { %p974_p3 = scmp.ne.s32.totalorder %s249_s25, %s973_s21  ;;  %s1176_s12 = smov [#allocation5]  }
  0x27   : > { %s978_s13 = sshll.u32 %s1176_s12, 4  ;;  %s979_s13 = int_to_ptr.vmem [resolvable:$false] %s978_s13 }
  0x28   : > { %s247_s9 = scalar_lea.hbm %s1530_s1, %s1306_s28  ;;  %p976_p4 = pnand %p974_p3, %p962_p2 }
  0x29   : > { %s980_s24 = scalar_lea.vmem %s979_s13, 512  ;;  %p981_p6 = scmp.lt.s32.totalorder %s249_s25, %s979_s13 }
  0x2a   : > { %p977_p5 = pneg %p976_p4  ;;  %p982_p7 = scmp.lt.s32.totalorder %s980_s24, %s973_s21 }
  0x2c   : > { %p983_p10 = por %p982_p7, %p981_p6 }
  0x2e   : > { %p984_p11 = pnand %p983_p10, %p977_p5 }
  0x30   : > { %987 = shalt.err (!%p984_p11)
}
  0x31   : > { %s1514_s26 = smov 128   ;;  %s1178_s6 = smov 8  }
  0x32   : > { %871 = dma.hbm_to_vmem [thread:$0]  (!%p1302_p0), %s247_s9, 256, %s249_s25, %s1315_s29, %s1514_s26, %s1514_s26, %s1178_s6  }
  0x33   : > { %p279_p13 = scmp.lt.s32.totalorder %s1174_s22, 9  ;;  %s1532_s0 = sld [smem:[#allocation21_spill]] }
  0x34   : > { %s214_s13 = scalar_lea.vmem [#allocation2], %s1296_s11  ;;  %s1533_s1 = sand.u32 1, %s1154_s17  }
  0x35   : > { %p1331_p3 = pnand %p811_p1, %p279_p13  ;;  %s225_s24 = sshll.u32 %s214_s13, 4  ;;  %s226_s24 = int_to_ptr.vmem [resolvable:$true] %s225_s24 }
  0x36   : > { %s211_s20 = scalar_lea.sflag [#allocation3], %s1533_s1  ;;  %s1001_s10 = scalar_lea.vmem %s226_s24, 256 }
  0x37   : > { %p1002_p4 = scmp.ne.s32.totalorder %s226_s24, %s1001_s10  ;;  %s1179_s25 = smov [#allocation2]  }
  0x38   : > { %s1006_s9 = sshll.u32 %s1179_s25, 4  ;;  %s1007_s9 = int_to_ptr.vmem [resolvable:$false] %s1006_s9 }
  0x39   : > { %s224_s12 = scalar_lea.hbm %s1532_s0, %s1306_s28  ;;  %p1004_p5 = pnand %p1002_p4, %p962_p2 }
  0x3a   : > { %s1008_s26 = scalar_lea.vmem %s1007_s9, 512  ;;  %p1009_p1 = scmp.lt.s32.totalorder %s226_s24, %s1007_s9 }
  0x3b   : > { %p1005_p6 = pneg %p1004_p5  ;;  %p1010_p7 = scmp.lt.s32.totalorder %s1008_s26, %s1001_s10 }
  0x3d   : > { %p1011_p10 = por %p1010_p7, %p1009_p1 }
  0x3f   : > { %p1012_p11 = pnand %p1011_p10, %p1005_p6 }
  0x41   : > { %1015 = shalt.err (!%p1012_p11)
}
  0x42   : > { %s1534_s27 = smov 128   ;;  %s270_s13 = scalar_lea.hbm %s1506_s2, %s1306_s28 }
  0x43   : > { %868 = dma.hbm_to_vmem [thread:$0]  (!%p1302_p0), %s224_s12, 256, %s226_s24, %s211_s20, %s1534_s27, %s1534_s27, %s1178_s6  }
  0x44   : > { %s262_s25 = scalar_lea.vmem [#allocation7], %s1296_s11  ;;  %s1180_s26 = smov [#allocation7]  }
  0x45   : > { %s271_s0 = sshll.u32 %s262_s25, 4  ;;  %s1034_s9 = sshll.u32 %s1180_s26, 4  ;;  %s272_s0 = int_to_ptr.vmem [resolvable:$true] %s271_s0  ;;  %s1035_s9 = int_to_ptr.vmem [resolvable:$false] %s1034_s9 }
  0x46   : > { %s1029_s10 = scalar_lea.vmem %s272_s0, 256  ;;  %s1036_s17 = scalar_lea.vmem %s1035_s9, 512 }
  0x47   : > { %p1030_p13 = scmp.ne.s32.totalorder %s272_s0, %s1029_s10  ;;  %p1037_p6 = scmp.lt.s32.totalorder %s272_s0, %s1035_s9 }
  0x48   : > { %p1038_p1 = scmp.lt.s32.totalorder %s1036_s17, %s1029_s10 }
  0x49   : > { %p1032_p4 = pnand %p1030_p13, %p962_p2 }
  0x4a   : > { %p1039_p7 = por %p1038_p1, %p1037_p6 }
  0x4b   : > { %p1033_p5 = pneg %p1032_p4 }
  0x4d   : > { %p1040_p10 = pnand %p1039_p7, %p1033_p5 }
  0x4f   : > { %1043 = shalt.err (!%p1040_p10)
}
  0x50   : > { %874 = dma.hbm_to_vmem [thread:$0]  (!%p1302_p0), %s270_s13, 256, %s272_s0, %s1315_s29, %s1534_s27, %s1534_s27, %s1178_s6  }
  0x51   : > { %283 = sbr.rel (%p1331_p3) target bundleno = 819 (0x333), region = 32  ;;  %s1367_s20 = sand.u32 (!%p1331_p3), 1, %s1150_s16  }
  0x52   : > { %s1370_s17 = sshll.u32 (!%p1331_p3), %s1367_s20, 4  ;;  %s286_s11 = scalar_lea.sflag (!%p1331_p3), [#allocation3], %s1367_s20 }
  0x53   : > { %s289_s28 = scalar_lea.vmem (!%p1331_p3), [#allocation2], %s1370_s17 }
  0x56   : > { %1129 = dma.done.wait (%p1275_p8), %s286_s11, 256  }
  0x57   : > { %1131 = vsyncadd (%p1275_p8), %s286_s11, 4294967040  ;;  %s294_s0 = sand.u32 1, %s1251_s23   ;;  %s298_s29 = scalar_lea.vmem [#allocation5], %s1370_s17 }
  0x58   : > { %s295_s14 = scalar_lea.sflag [#allocation6], %s294_s0 }
  0x59   : > { %1133 = dma.done.wait (%p1275_p8), %s295_s14, 512  }
  0x5a   : > { %1135 = vsyncadd (%p1275_p8), %s295_s14, 4294966784  ;;  %vm358_vm0 = vcmask 523264   ;;  %v353_v0 = vld [vmem:[%s298_s29 + $0x8] sm:$0xff]  ;;  %v352_v1 = vld [vmem:[%s298_s29] sm:$0xff]  ;;  %v447_v6 = vlaneseq  ;;  %vm459_vm3 = vcmask 130048   ;;  %s307_s23 = scalar_lea.vmem [#allocation7], %s1370_s17 }
  0x5b   : > { %v350_v2 = vld [vmem:[%s289_s28] sm:$0xff]  ;;  %841 = vmatprep.subr.msk.mxu0 %vm358_vm0, %v353_v0  ;;  %v351_v4 = vld [vmem:[%s289_s28 + $0x8] sm:$0xff]  ;;  %s346_s30 = scalar_lea.vmem [#allocation9], %s1370_s17  ;;  %s825_s6 = sshll.u32 %s1158_s18, 1 }
  0x5c   : > { %v356_v3 = vmul.f32 0.125, %v350_v2  ;;  %842 = vmatpush3.xpose.msk.msra.mxu0 %vm358_vm0, %v353_v0  ;;  %v357_v5 = vmul.f32 0.125, %v351_v4  ;;  %v448_v7 = vshrl.u32 %v447_v6, 7  ;;  %v454_v9 = vand.u32 127, %v447_v6  ;;  %v355_v26 = vld [vmem:[%s307_s23 + $0x8] sm:$0xff]  ;;  %v354_v27 = vld [vmem:[%s307_s23] sm:$0xff] }
  0x5d   : > { %843 = vmatprep.subr.msk.mxu0 %vm358_vm0, %v352_v1  ;;  %848 = vmatprep.subr.mxu1 %v355_v26  ;;  %s826_s21 = sshll.u32 %s1162_s19, 3  ;;  %s612_s13 = sshll.u32 %s346_s30, 4  ;;  %s1412_s13 = int_to_ptr.vmem [resolvable:$true] %s612_s13 }
  0x5e   : > { %845 = vmatprep.mubr.msk.f32.mxu0 %vm358_vm0, %v356_v3  ;;  %v449_v8 = vadd.s32 8, %v448_v7  ;;  %vm455_vm1 = vcmp.ge.s32.totalorder %v448_v7, %v454_v9  ;;  %849 = vmatpush3.msra.mxu1 %v355_v26  ;;  %s1402_s12 = sadd.s32 %s826_s21, %s825_s6  ;;  %s575_s25 = scalar_lea.sflag [#allocation10], %s1367_s20 }
  0x5f   : > { %850 = vmatprep.subr.mxu1 %v354_v27  ;;  %s827_s24 = sshll.u32 %s1402_s12, 7  ;;  %s1044_s18 = scalar_lea.vmem %s1412_s13, 256 }
  0x60   : > { %844 = vmatpush3.xpose.msk.msra.mxu0 %vm358_vm0, %v352_v1  ;;  %vm456_vm2 = vcmp.ge.s32.totalorder %v449_v8, %v454_v9  ;;  %851 = vmatpush3.msra.mxu1 %v354_v27  ;;  %s1410_s7 = scalar_lea.hbm %s1508_s4, %s827_s24  ;;  %p1045_p8 = scmp.ne.s32.totalorder %s1412_s13, %s1044_s18 }
  0x61   : > { %s1181_s19 = smov [#allocation9]  }
  0x62   : > { %p1046_p0 = pnand %p1045_p8, %p1279_p9  ;;  %s1048_s10 = sshll.u32 %s1181_s19, 4  ;;  %s1049_s10 = int_to_ptr.vmem [resolvable:$false] %s1048_s10 }
  0x63   : > { %846 = vmatmul.mubr.msk.f32.vlgmr.msra.gmra.mxu0 %vm358_vm0, %v357_v5  ;;  %s1050_s26 = scalar_lea.vmem %s1049_s10, 512  ;;  %p1051_p3 = scmp.lt.s32.totalorder %s1412_s13, %s1049_s10 }
  0x64   : > { %p1047_p2 = pneg %p1046_p0  ;;  %p1052_p11 = scmp.lt.s32.totalorder %s1050_s26, %s1044_s18 }
  0x66   : > { %p1053_p13 = por %p1052_p11, %p1051_p3 }
  0x68   : > { %p1054_p4 = pnand %p1053_p13, %p1047_p2 }
 0x123   : > { %v847_v10 = vpop.f32.mrf.mxu0 }
 0x124   : > { %v458_v14 = vsel %vm456_vm2, %v847_v10, -1e+30 }
 0x125   : > { %v437_v11 = vpop.f32.mrf.mxu0  ;;  %v463_v15 = vsel %vm459_vm3, %v458_v14, -inf }
 0x126   : > { %v457_v12 = vsel %vm455_vm1, %v437_v11, -1e+30 }
 0x127   : > { %v460_v13 = vsel %vm459_vm3, %v457_v12, -inf }
 0x128   : > { %461 = vmax.xlane.f32.xlu0 %v460_v13 }
 0x12c   : > { %464 = vmax.xlane.f32.xlu0 %v463_v15 }
 0x1b1   : > { %v462_v16 = vpop.xlane.xlu0 %461 }
 0x1b2   : > { %v466_v17 = vsub.f32 %v457_v12, %v462_v16 }
 0x1b4   : > { %v468_v18 = vmul.f32 1.442695, %v466_v17 }
 0x1b5   : > { %v465_v19 = vpop.xlane.xlu0 %464 }
 0x1b6   : > { %952 = vpow2.f32 %v468_v18  ;;  %v467_v20 = vsub.f32 %v458_v14, %v465_v19 }
 0x1b8   : > { %v470_v21 = vmul.f32 1.442695, %v467_v20 }
 0x1ba   : > { %954 = vpow2.f32 %v470_v21 }
 0x1c3   : > { %v953_v22 = vpop.eup %952 }
 0x1c4   : > { %v472_v23 = vsel %vm459_vm3, %v953_v22, 0.0 }
 0x1c5   : > { %473 = vadd.xlane.f32.xlu1 %v472_v23 }
 0x1c7   : > { %v955_v24 = vpop.eup %954 }
 0x1c8   : > { %v475_v25 = vsel %vm459_vm3, %v955_v24, 0.0 }
 0x1c9   : > { %476 = vadd.xlane.f32.xlu1 %v475_v25 }
 0x24e   : > { %v474_v28 = vpop.xlane.xlu1 %473 }
 0x24f   : > { %956 = vrcp.f32 %v474_v28 }
 0x252   : > { %v477_v29 = vpop.xlane.xlu1 %476 }
 0x253   : > { %958 = vrcp.f32 %v477_v29 }
 0x25c   : > { %v957_v30 = vpop.eup %956 }
 0x25d   : > { %v482_v31 = vmul.f32 %v957_v30, %v953_v22 }
 0x25f   : > { %852 = vmatprep.mubr.msk.f32.mxu1 %vm459_vm3, %v482_v31  ;;  %567 = vst.msk [vmem:[%s346_s30] sm:$0xff] %vm459_vm3, %v482_v31 }
 0x260   : > { %v959_v32 = vpop.eup %958 }
 0x261   : > { %v483_v33 = vmul.f32 %v959_v32, %v955_v24 }
 0x263   : > { %853 = vmatmul.mubr.msk.f32.vlgmr.msra.gmra.mxu1 %vm459_vm3, %v483_v33  ;;  %568 = vst.msk [vmem:[%s346_s30 + $0x8] sm:$0xff] %vm459_vm3, %v483_v33 }
 0x264   : > { %1057 = shalt.err (!%p1054_p4)
}
 0x265   : > { %s1058_s9 = scalar_lea.hbm %s1410_s7, 256  ;;  %s1062_s0 = scalar_lea.hbm %s1508_s4, 2048 }
 0x266   : > { %p1059_p5 = scmp.ne.s32.totalorder %s1410_s7, %s1058_s9  ;;  %p1063_p7 = scmp.lt.s32.totalorder %s1410_s7, %s1508_s4 }
 0x267   : > { %p1064_p10 = scmp.lt.s32.totalorder %s1062_s0, %s1058_s9 }
 0x268   : > { %p1060_p6 = pnand %p1059_p5, %p1279_p9 }
 0x269   : > { %p1065_p8 = por %p1064_p10, %p1063_p7 }
 0x26a   : > { %p1061_p1 = pneg %p1060_p6 }
 0x26c   : > { %p1066_p0 = pnand %p1065_p8, %p1061_p1 }
 0x26e   : > { %1069 = shalt.err (!%p1066_p0)
}
 0x26f   : > { %s1182_s23 = smov 128   ;;  %s1183_s30 = smov 8  }
 0x270   : > { %862 = dma.vmem_to_hbm [thread:$0]  (%p1279_p9), %s1412_s13, 256, %s1410_s7, %s575_s25, %s1182_s23, %s1182_s23, %s1183_s30  }
 0x271   : > { %s339_s6 = scalar_lea.vmem [#allocation8], %s1370_s17  ;;  %s1449_s18 = scalar_lea.hbm %s1507_s3, %s827_s24 }
 0x272   : > { %s592_s21 = sshll.u32 %s339_s6, 4  ;;  %s570_s7 = scalar_lea.sflag [#allocation4], %s1367_s20  ;;  %s1441_s21 = int_to_ptr.vmem [resolvable:$true] %s592_s21 }
 0x273   : > { %s1070_s17 = scalar_lea.vmem %s1441_s21, 256  ;;  %s1184_s13 = smov [#allocation8]  }
 0x274   : > { %p1071_p2 = scmp.ne.s32.totalorder %s1441_s21, %s1070_s17  ;;  %s1074_s25 = sshll.u32 %s1184_s13, 4  ;;  %s1075_s25 = int_to_ptr.vmem [resolvable:$false] %s1074_s25 }
 0x275   : > { %s1076_s19 = scalar_lea.vmem %s1075_s25, 512  ;;  %p1077_p13 = scmp.lt.s32.totalorder %s1441_s21, %s1075_s25 }
 0x276   : > { %p1072_p3 = pnand %p1071_p2, %p1279_p9  ;;  %p1078_p4 = scmp.lt.s32.totalorder %s1076_s19, %s1070_s17 }
 0x278   : > { %p1073_p11 = pneg %p1072_p3  ;;  %p1079_p5 = por %p1078_p4, %p1077_p13 }
 0x27a   : > { %p1080_p6 = pnand %p1079_p5, %p1073_p11 }
 0x323   : > { %v854_v34 = vpop.f32.mrf.mxu1 }
 0x324   : > { %566 = vst.msk [vmem:[%s339_s6 + $0x8] sm:$0xff] %vm358_vm0, %v854_v34 }
 0x325   : > { %v556_v35 = vpop.f32.mrf.mxu1 }
 0x326   : > { %565 = vst.msk [vmem:[%s339_s6] sm:$0xff] %vm358_vm0, %v556_v35 }
 0x327   : > { %1083 = shalt.err (!%p1080_p6)
}
 0x328   : > { %s1084_s12 = scalar_lea.hbm %s1449_s18, 256  ;;  %s1088_s10 = scalar_lea.hbm %s1507_s3, 2048 }
 0x329   : > { %p1085_p1 = scmp.ne.s32.totalorder %s1449_s18, %s1084_s12  ;;  %p1089_p8 = scmp.lt.s32.totalorder %s1449_s18, %s1507_s3 }
 0x32a   : > { %p1090_p0 = scmp.lt.s32.totalorder %s1088_s10, %s1084_s12 }
 0x32b   : > { %p1086_p7 = pnand %p1085_p1, %p1279_p9 }
 0x32c   : > { %p1091_p2 = por %p1090_p0, %p1089_p8 }
 0x32d   : > { %p1087_p10 = pneg %p1086_p7 }
 0x32f   : > { %p1092_p3 = pnand %p1091_p2, %p1087_p10 }
 0x331   : > { %1095 = shalt.err (!%p1092_p3)
}
 0x332   : > { %861 = dma.vmem_to_hbm [thread:$0]  (%p1279_p9), %s1441_s21, 256, %s1449_s18, %s570_s7, %s1182_s23, %s1182_s23, %s1183_s30  }
 0x333 PF: > { %p883_p11 = scmp.ge.s32.totalorder %s1174_s22, 2  ;;  %s627_s11 = sand.u32 1, %s1146_s15  }
 0x334   : > { %s628_s28 = scalar_lea.sflag [#allocation4], %s627_s11 }
 0x335   : > { %p876_p13 = pnand %p883_p11, %p1285_p12 }
 0x337   : > { %p877_p4 = pneg %p876_p13 }
 0x339   : > { %1137 = dma.done.wait (%p877_p4), %s628_s28, 256  }
 0x33a   : > { %1139 = vsyncadd (%p877_p4), %s628_s28, 4294967040  ;;  %s637_s0 = scalar_lea.sflag [#allocation10], %s627_s11 }
 0x33b   : > { %1141 = dma.done.wait (%p877_p4), %s637_s0, 256  }
 0x33c   : > { %1143 = vsyncadd (%p877_p4), %s637_s0, 4294967040  ;;  %s27_s22 = sadd.s32 1, %s1174_s22   ;;  %s1535_s5 = sld [smem:[#allocation15_spill]] }
 0x33d   : > { %p24_p5 = scmp.ge.s32.totalorder %s27_s22, 10   ;;  %s1536_s17 = sld [smem:[#allocation20_spill]] }
 0x33e   : > { %s1537_s18 = sld [smem:[#allocation16_spill]]  ;;  %s1541_s15 = smov %s1150_s16 }
 0x33f   : > { %s1538_s19 = sld [smem:[#allocation17_spill]]  ;;  %26 = sbr.rel (!%p24_p5) target bundleno = 14 (0xe), region = 118 }
 0x340   : > { %s1539_s20 = sld [smem:[#allocation18_spill]] }
 0x341   : > { %s1540_s21 = sld [smem:[#allocation19_spill]] }
 0x342   : > { %s1542_s16 = smov %s1535_s5 }
 0x344   :  { %642 = vsyncpa [#allocation3], 1 }
 0x345   :  { %644 = vsyncpa [#allocation3 + $0x1], 1 }
 0x346   :  { %645 = vsyncpa [#allocation6], 1 }
 0x347   :  { %647 = vsyncpa [#allocation6 + $0x1], 1 }
 0x348   :  { %648 = vsyncpa [#allocation4], 1 }
 0x349   :  { %650 = vsyncpa [#allocation4 + $0x1], 1 }
 0x34a   :  { %651 = vsyncpa [#allocation10], 1 }
 0x34b   :  { %653 = vsyncpa [#allocation10 + $0x1], 1 }

</bundles_post_ra>
